<compile_context>
chip_gen: v7x
topology: tpu7x:2x2x1
jax: 0.10.0
libtpu: 0.0.40
codegen_flags: <defaults>
</compile_context>

<pallas_src>
import functools

import jax
import jax.numpy as jnp
from jax.experimental import pallas as pl
from jax.experimental.pallas import tpu as pltpu

INPUT_SIZE = 784
HIDDEN_SIZE = 100
NUM_CLASSES = 10

# lane-dense padded widths (multiples of 128)
HIDDEN_PAD = 128
OUT_PAD = 128

TM_MAX_DEFAULT = 2048     # bf16 x tile: 2048*784*2 B = ~3.1 MiB (x2 buffers)
SPLIT_MIN_BATCH = 512     # above this, force >=2 tiles so v7x's 2 TCs both run


def _cdiv(a, b):
    return (a + b - 1) // b


def _round_up(x, m):
    return ((x + m - 1) // m) * m


def mlp_kernel(x_ref, w1_ref, b1_ref, w2_ref, b2_ref, o_ref):
    # fc1: (TM, 784)bf16 @ (784, 128)bf16 -> f32 accumulator (hidden 100->128)
    h = jnp.dot(x_ref[...], w1_ref[...], preferred_element_type=jnp.float32)
    h = jnp.maximum(h + b1_ref[...], 0.0)            # bias + ReLU in f32
    # fc2: (TM, 128)bf16 @ (128, 128)bf16 -> f32 accumulator (classes 10->128)
    out = jnp.dot(h.astype(jnp.bfloat16), w2_ref[...],
                  preferred_element_type=jnp.float32)
    o_ref[...] = (out + b2_ref[...]).astype(o_ref.dtype)


def prepare_params(w1, b1, w2, b2):
    """One-time transform of PyTorch-layout params:
       fc.weight (out, in) -> transposed (in, out), zero-padded to 128-wide
       lane-dense shapes, weights cast to bf16 (MXU inputs), biases kept f32
       (added on the f32 accumulator)."""
    w1p = jnp.zeros((INPUT_SIZE, HIDDEN_PAD), jnp.bfloat16)
    w1p = w1p.at[:, :HIDDEN_SIZE].set(w1.T.astype(jnp.bfloat16))
    b1p = jnp.zeros((1, HIDDEN_PAD), jnp.float32)
    b1p = b1p.at[:, :HIDDEN_SIZE].set(b1.astype(jnp.float32))
    w2p = jnp.zeros((HIDDEN_PAD, OUT_PAD), jnp.bfloat16)
    w2p = w2p.at[:HIDDEN_SIZE, :NUM_CLASSES].set(w2.T.astype(jnp.bfloat16))
    b2p = jnp.zeros((1, OUT_PAD), jnp.float32)
    b2p = b2p.at[:, :NUM_CLASSES].set(b2.astype(jnp.float32))
    return w1p, b1p, w2p, b2p


@functools.partial(jax.jit, static_argnames=("tm_max",))
def neural_net_forward(x, w1p, b1p, w2p, b2p, tm_max=TM_MAX_DEFAULT):
    """Forward pass of NeuralNet on pre-prepared (padded, transposed, bf16) params."""
    x2d = x.reshape(-1, INPUT_SIZE).astype(jnp.bfloat16)
    batch = x2d.shape[0]

    # --- choose batch tile ---
    tm_max = _round_up(max(int(tm_max), 8), 8)        # sublane-align caller value
    num_tiles = _cdiv(batch, tm_max)
    if num_tiles == 1 and batch >= SPLIT_MIN_BATCH:
        num_tiles = 2                                  # v7x: a tile for each TC
    tm = _round_up(_cdiv(batch, num_tiles), 8)         # balanced, 8-aligned tile
    num_tiles = _cdiv(batch, tm)
    rows_out = num_tiles * tm                          # dense output slab (no masked store)

    flops = 2 * rows_out * (INPUT_SIZE * HIDDEN_PAD + HIDDEN_PAD * OUT_PAD)
    bytes_accessed = (2 * rows_out * INPUT_SIZE                               # x (bf16)
                      + 2 * (INPUT_SIZE * HIDDEN_PAD + HIDDEN_PAD * OUT_PAD)  # w1, w2 (bf16)
                      + 4 * (HIDDEN_PAD + OUT_PAD)                            # b1, b2 (f32)
                      + 2 * rows_out * OUT_PAD)                               # out (bf16)

    out = pl.pallas_call(
        mlp_kernel,
        out_shape=jax.ShapeDtypeStruct((rows_out, OUT_PAD), jnp.bfloat16),
        grid_spec=pl.GridSpec(
            grid=(num_tiles,),
            in_specs=[
                pl.BlockSpec((tm, INPUT_SIZE), lambda i: (i, 0)),
                pl.BlockSpec((INPUT_SIZE, HIDDEN_PAD), lambda i: (0, 0)),
                pl.BlockSpec((1, HIDDEN_PAD), lambda i: (0, 0)),
                pl.BlockSpec((HIDDEN_PAD, OUT_PAD), lambda i: (0, 0)),
                pl.BlockSpec((1, OUT_PAD), lambda i: (0, 0)),
            ],
            out_specs=pl.BlockSpec((tm, OUT_PAD), lambda i: (i, 0)),
        ),
        compiler_params=pltpu.CompilerParams(
            dimension_semantics=("parallel",),
            vmem_limit_bytes=32 * 1024 * 1024,
        ),
        cost_estimate=pl.CostEstimate(
            flops=flops, transcendentals=0, bytes_accessed=bytes_accessed),
    )(x2d, w1p, b1p, w2p, b2p)

    # strip batch overshoot rows and the lane padding of the class dim
    return out[:batch, :NUM_CLASSES]


def init_params(key):
    # deterministic init mirroring nn.Linear shapes:
    # fc1.weight: (100, 784), fc1.bias: (100,)
    # fc2.weight: (10, 100),  fc2.bias: (10,)
    k1, k2, k3, k4 = jax.random.split(key, 4)
    bound1 = 1.0 / (INPUT_SIZE ** 0.5)
    bound2 = 1.0 / (HIDDEN_SIZE ** 0.5)
    w1 = jax.random.uniform(k1, (HIDDEN_SIZE, INPUT_SIZE), jnp.float32,
                            -bound1, bound1)
    b1 = jax.random.uniform(k2, (HIDDEN_SIZE,), jnp.float32, -bound1, bound1)
    w2 = jax.random.uniform(k3, (NUM_CLASSES, HIDDEN_SIZE), jnp.float32,
                            -bound2, bound2)
    b2 = jax.random.uniform(k4, (NUM_CLASSES,), jnp.float32, -bound2, bound2)
    return w1, b1, w2, b2


def reference_bf16(x, w1, b1, w2, b2):
    """Plain-JAX reference matching the kernel's precision choices:
       bf16 inputs/weights, f32 accumulation, bf16 hidden re-cast."""
    x2d = x.reshape(-1, INPUT_SIZE).astype(jnp.bfloat16).astype(jnp.float32)
    w1b = w1.astype(jnp.bfloat16).astype(jnp.float32)
    w2b = w2.astype(jnp.bfloat16).astype(jnp.float32)
    h = jnp.maximum(x2d @ w1b.T + b1, 0.0)
    h = h.astype(jnp.bfloat16).astype(jnp.float32)
    return h @ w2b.T + b2


if __name__ == "__main__":
    key = jax.random.PRNGKey(0)
    kx, kp = jax.random.split(key)

    w1, b1, w2, b2 = init_params(kp)
    # one-time param prep (transpose + lane-padding + bf16) outside the hot path
    w1p, b1p, w2p, b2p = prepare_params(w1, b1, w2, b2)

    # 1) MNIST-like input: batch=8 images of 1x28x28 (flattens to 784)
    x = jax.random.normal(kx, (8, 1, 28, 28), jnp.float32)
    out = jax.block_until_ready(neural_net_forward(x, w1p, b1p, w2p, b2p))
    ref = reference_bf16(x, w1, b1, w2, b2)
    assert out.shape == (8, NUM_CLASSES)
    assert bool(jnp.allclose(out.astype(jnp.float32), ref, atol=2e-2, rtol=2e-2))

    # 2) batch not a tile multiple (ragged last input tile), multi-tile grid
    x_big = jax.random.normal(kx, (37, 1, 28, 28), jnp.float32)
    out_big = jax.block_until_ready(
        neural_net_forward(x_big, w1p, b1p, w2p, b2p, tm_max=16))
    ref_big = reference_bf16(x_big, w1, b1, w2, b2)
    assert out_big.shape == (37, NUM_CLASSES)
    assert bool(jnp.allclose(out_big.astype(jnp.float32), ref_big,
                             atol=2e-2, rtol=2e-2))

    # 3) batch large enough to trigger the >=2-tile (v7x dual-TC) split path
    x_split = jax.random.normal(kx, (600, 1, 28, 28), jnp.float32)
    out_split = jax.block_until_ready(
        neural_net_forward(x_split, w1p, b1p, w2p, b2p))
    ref_split = reference_bf16(x_split, w1, b1, w2, b2)
    assert out_split.shape == (600, NUM_CLASSES)
    assert bool(jnp.allclose(out_split.astype(jnp.float32), ref_split,
                             atol=2e-2, rtol=2e-2))

    print("KERNEL_OK")
</pallas_src>

<mosaic_0001>
module attributes {stable_mosaic.version = 11 : i64} {
  func.func @mlp_kernel(%arg0: i32, %arg1: memref<8x784xbf16, #tpu.memory_space<vmem>>, %arg2: memref<784x128xbf16, #tpu.memory_space<vmem>>, %arg3: memref<1x128xf32, #tpu.memory_space<vmem>>, %arg4: memref<128x128xbf16, #tpu.memory_space<vmem>>, %arg5: memref<1x128xf32, #tpu.memory_space<vmem>>, %arg6: memref<8x128xbf16, #tpu.memory_space<vmem>>) attributes {dimension_semantics = [#tpu.dimension_semantics<parallel>], iteration_bounds = array<i64: 1>, scalar_prefetch = 0 : i64, scratch_operands = 0 : i64, tpu.core_type = #tpu.core_type<tc>, window_params = [{transform_indices = @transform_0, window_bounds = array<i64: 8, 784>}, {pipeline_mode = #tpu.pipeline_mode<synchronous>, transform_indices = @transform_1, window_bounds = array<i64: 784, 128>}, {pipeline_mode = #tpu.pipeline_mode<synchronous>, transform_indices = @transform_2, window_bounds = array<i64: 1, 128>}, {pipeline_mode = #tpu.pipeline_mode<synchronous>, transform_indices = @transform_3, window_bounds = array<i64: 128, 128>}, {pipeline_mode = #tpu.pipeline_mode<synchronous>, transform_indices = @transform_4, window_bounds = array<i64: 1, 128>}, {transform_indices = @transform_5, window_bounds = array<i64: 8, 128>}]} {
    %c0 = arith.constant 0 : index
    %c0_0 = arith.constant 0 : index
    %0 = vector.load %arg1[%c0, %c0_0] : memref<8x784xbf16, #tpu.memory_space<vmem>>, vector<8x784xbf16>
    %c0_1 = arith.constant 0 : index
    %c0_2 = arith.constant 0 : index
    %1 = vector.load %arg2[%c0_1, %c0_2] : memref<784x128xbf16, #tpu.memory_space<vmem>>, vector<784x128xbf16>
    %cst = arith.constant dense<0.000000e+00> : vector<8x128xf32>
    %2 = tpu.matmul %0, %1, %cst {dimension_numbers = #tpu.dot_dimension_numbers<[1], [0], [0], [1], [0, 0, 1, 1], [], []>} : vector<8x784xbf16>, vector<784x128xbf16>, vector<8x128xf32> -> vector<8x128xf32>
    %c0_3 = arith.constant 0 : index
    %c0_4 = arith.constant 0 : index
    %3 = vector.load %arg3[%c0_3, %c0_4] : memref<1x128xf32, #tpu.memory_space<vmem>>, vector<1x128xf32>
    %4 = vector.broadcast %3 : vector<1x128xf32> to vector<8x128xf32>
    %5 = arith.addf %2, %4 : vector<8x128xf32>
    %cst_5 = arith.constant 0.000000e+00 : f32
    %6 = vector.broadcast %cst_5 : f32 to vector<8x128xf32>
    %7 = arith.maximumf %5, %6 : vector<8x128xf32>
    %8 = arith.truncf %7 : vector<8x128xf32> to vector<8x128xbf16>
    %c0_6 = arith.constant 0 : index
    %c0_7 = arith.constant 0 : index
    %9 = vector.load %arg4[%c0_6, %c0_7] : memref<128x128xbf16, #tpu.memory_space<vmem>>, vector<128x128xbf16>
    %cst_8 = arith.constant dense<0.000000e+00> : vector<8x128xf32>
    %10 = tpu.matmul %8, %9, %cst_8 {dimension_numbers = #tpu.dot_dimension_numbers<[1], [0], [0], [1], [0, 0, 1, 1], [], []>} : vector<8x128xbf16>, vector<128x128xbf16>, vector<8x128xf32> -> vector<8x128xf32>
    %c0_9 = arith.constant 0 : index
    %c0_10 = arith.constant 0 : index
    %11 = vector.load %arg5[%c0_9, %c0_10] : memref<1x128xf32, #tpu.memory_space<vmem>>, vector<1x128xf32>
    %12 = vector.broadcast %11 : vector<1x128xf32> to vector<8x128xf32>
    %13 = arith.addf %10, %12 : vector<8x128xf32>
    %14 = arith.truncf %13 : vector<8x128xf32> to vector<8x128xbf16>
    %c0_11 = arith.constant 0 : index
    %c0_12 = arith.constant 0 : index
    %15 = vector.load %arg6[%c0_11, %c0_12] : memref<8x128xbf16, #tpu.memory_space<vmem>>, vector<8x128xbf16>
    tpu.vector_store %arg6[%c0_11, %c0_12], %14 {strides = array<i32>} : memref<8x128xbf16, #tpu.memory_space<vmem>>, vector<8x128xbf16>,
    return
  }
  func.func @transform_0(%arg0: i32) -> (i32, i32) {
    %c0_i32 = arith.constant 0 : i32
    %c0_i32_0 = arith.constant 0 : i32
    return %arg0, %c0_i32 : i32, i32
  }
  func.func @transform_1(%arg0: i32) -> (i32, i32) {
    %c0_i32 = arith.constant 0 : i32
    %c0_i32_0 = arith.constant 0 : i32
    %c0_i32_1 = arith.constant 0 : i32
    return %c0_i32, %c0_i32_0 : i32, i32
  }
  func.func @transform_2(%arg0: i32) -> (i32, i32) {
    %c0_i32 = arith.constant 0 : i32
    %c0_i32_0 = arith.constant 0 : i32
    %c0_i32_1 = arith.constant 0 : i32
    return %c0_i32, %c0_i32_0 : i32, i32
  }
  func.func @transform_3(%arg0: i32) -> (i32, i32) {
    %c0_i32 = arith.constant 0 : i32
    %c0_i32_0 = arith.constant 0 : i32
    %c0_i32_1 = arith.constant 0 : i32
    return %c0_i32, %c0_i32_0 : i32, i32
  }
  func.func @transform_4(%arg0: i32) -> (i32, i32) {
    %c0_i32 = arith.constant 0 : i32
    %c0_i32_0 = arith.constant 0 : i32
    %c0_i32_1 = arith.constant 0 : i32
    return %c0_i32, %c0_i32_0 : i32, i32
  }
  func.func @transform_5(%arg0: i32) -> (i32, i32) {
    %c0_i32 = arith.constant 0 : i32
    %c0_i32_0 = arith.constant 0 : i32
    return %arg0, %c0_i32 : i32, i32
  }
}

</mosaic_0001>

<bundles_post_ra>
// kernel: neural_net_forward.1
= control target key start
LH: loop header
LB: loop body
LE: loop exit
PB: predicated region body
PF: predicated region fallthrough
CT: control target
= control target key end

     0   :  { %v1003_v43 = vmov 0.0   ;;  %vm1004_vm0 = vmmov 0   ;;  %vm449_vm1 = vcmask 130048   ;;  %s1239_s0 = inlined_call_operand.vmem [shape: bf16[8,784], index: 0, kind: input, shape index: {}]   ;;  %s1240_s1 = inlined_call_operand.vmem [shape: bf16[784,128], index: 1, kind: input, shape index: {}]   ;;  %s1241_s2 = inlined_call_operand.vmem [shape: f32[1,128], index: 2, kind: input, shape index: {}]   ;;  %s1242_s3 = inlined_call_operand.vmem [shape: bf16[128,128], index: 3, kind: input, shape index: {}]   ;;  %s1243_s4 = inlined_call_operand.vmem [shape: f32[1,128], index: 4, kind: input, shape index: {}]   ;;  %s1244_s5 = inlined_call_operand.hbm [shape: bf16[8,128], index: 5, kind: output, shape index: {}]  }
   0x1   :  { %v915_v0 = vld [vmem:[%s1240_s1 + $0x40] sm:$0xff]   ;;  %v919_v4 = vld [vmem:[%s1240_s1 + $0x48] sm:$0xff]   ;;  %v923_v8 = vld [vmem:[%s1240_s1 + $0x50] sm:$0xff]  }
   0x2   :  { %v916_v1 = vld [vmem:[%s1240_s1] sm:$0xff]   ;;  %809 = vmatprep.subr.bf16.mxu0 %v915_v0  ;;  %v920_v5 = vld [vmem:[%s1240_s1 + $0x8] sm:$0xff]   ;;  %v924_v9 = vld [vmem:[%s1240_s1 + $0x10] sm:$0xff]  }
   0x3   :  { %v917_v2 = vld [vmem:[%s1240_s1 + $0xc0] sm:$0xff]   ;;  %810 = vmatpush3.bf16.msra.mxu0 %v916_v1  ;;  %v921_v6 = vld [vmem:[%s1240_s1 + $0xc8] sm:$0xff]   ;;  %v925_v10 = vld [vmem:[%s1240_s1 + $0xd0] sm:$0xff]  }
   0x4   :  { %v918_v3 = vld [vmem:[%s1240_s1 + $0x80] sm:$0xff]   ;;  %831 = vmatprep.subr.bf16.mxu1 %v917_v2  ;;  %811 = vmatprep.subr.bf16.mxu0 %v919_v4  ;;  %v922_v7 = vld [vmem:[%s1240_s1 + $0x88] sm:$0xff]   ;;  %v926_v11 = vld [vmem:[%s1240_s1 + $0x90] sm:$0xff]  }
   0x5   :  { %832 = vmatpush3.bf16.msra.mxu1 %v918_v3  ;;  %v927_v12 = vld [vmem:[%s1240_s1 + $0x58] sm:$0xff]   ;;  %v931_v16 = vld [vmem:[%s1240_s1 + $0x60] sm:$0xff]   ;;  %v935_v20 = vld [vmem:[%s1240_s1 + $0x68] sm:$0xff]  }
   0x6   :  { %833 = vmatprep.subr.bf16.mxu1 %v921_v6  ;;  %v928_v13 = vld [vmem:[%s1240_s1 + $0x18] sm:$0xff]   ;;  %v932_v17 = vld [vmem:[%s1240_s1 + $0x20] sm:$0xff]   ;;  %v936_v21 = vld [vmem:[%s1240_s1 + $0x28] sm:$0xff]  }
   0x7   :  { %812 = vmatpush3.bf16.msra.mxu0 %v920_v5  ;;  %v929_v14 = vld [vmem:[%s1240_s1 + $0xd8] sm:$0xff]   ;;  %v933_v18 = vld [vmem:[%s1240_s1 + $0xe0] sm:$0xff]   ;;  %v937_v22 = vld [vmem:[%s1240_s1 + $0xe8] sm:$0xff]  }
   0x8   :  { %813 = vmatprep.subr.bf16.mxu0 %v923_v8  ;;  %v930_v15 = vld [vmem:[%s1240_s1 + $0x98] sm:$0xff]   ;;  %v934_v19 = vld [vmem:[%s1240_s1 + $0xa0] sm:$0xff]   ;;  %v938_v23 = vld [vmem:[%s1240_s1 + $0xa8] sm:$0xff]  }
   0x9   :  { %834 = vmatpush3.bf16.msra.mxu1 %v922_v7  ;;  %v939_v24 = vld [vmem:[%s1240_s1 + $0x70] sm:$0xff]   ;;  %v943_v28 = vld [vmem:[%s1240_s1 + $0x78] sm:$0xff]   ;;  %v22_v31 = vld [vmem:[%s1239_s0] sm:$0xff] }
   0xa   :  { %835 = vmatprep.subr.bf16.mxu1 %v925_v10  ;;  %v940_v25 = vld [vmem:[%s1240_s1 + $0x30] sm:$0xff]   ;;  %v944_v29 = vld [vmem:[%s1240_s1 + $0x38] sm:$0xff]   ;;  %v743_v32 = vcombine.low %v22_v31, %v22_v31  ;;  %v744_v33 = vcombine.high %v22_v31, %v22_v31  ;;  %v949_v35 = vld [vmem:[%s1240_s1 + $0x140] sm:$0xff]  }
   0xb   :  { %814 = vmatpush3.bf16.msra.mxu0 %v924_v9  ;;  %v941_v26 = vld [vmem:[%s1240_s1 + $0xf0] sm:$0xff]   ;;  %v945_v30 = vld [vmem:[%s1240_s1 + $0xf8] sm:$0xff]   ;;  %v23_v36 = vld [vmem:[%s1239_s0 + $0x8] sm:$0xff] }
   0xc   :  { %815 = vmatprep.subr.bf16.mxu0 %v927_v12  ;;  %v942_v27 = vld [vmem:[%s1240_s1 + $0xb0] sm:$0xff]   ;;  %v948_v34 = vld [vmem:[%s1240_s1 + $0xb8] sm:$0xff]   ;;  %485 = vmatprep.mubr.bf16.mxu0 %v744_v33  ;;  %v745_v37 = vcombine.low %v23_v36, %v23_v36  ;;  %v746_v38 = vcombine.high %v23_v36, %v23_v36  ;;  %v952_v39 = vld [vmem:[%s1240_s1 + $0x100] sm:$0xff]  }
   0xd   :  { %836 = vmatpush3.bf16.msra.mxu1 %v926_v11  ;;  %v953_v40 = vld [vmem:[%s1240_s1 + $0x148] sm:$0xff]   ;;  %v955_v42 = vld [vmem:[%s1240_s1 + $0x150] sm:$0xff]   ;;  %v957_v45 = vld [vmem:[%s1240_s1 + $0x158] sm:$0xff]  }
   0xe   :  { %837 = vmatprep.subr.bf16.mxu1 %v929_v14  ;;  %525 = vmatprep.mubr.bf16.mxu1 %v746_v38  ;;  %v954_v41 = vld [vmem:[%s1240_s1 + $0x108] sm:$0xff]   ;;  %v956_v44 = vld [vmem:[%s1240_s1 + $0x110] sm:$0xff]   ;;  %v958_v46 = vld [vmem:[%s1240_s1 + $0x118] sm:$0xff]  }
   0xf   :  { %816 = vmatpush3.bf16.msra.mxu0 %v928_v13  ;;  %v959_v47 = vld [vmem:[%s1240_s1 + $0x160] sm:$0xff]   ;;  %v961_v49 = vld [vmem:[%s1240_s1 + $0x168] sm:$0xff]   ;;  %v24_v51 = vld [vmem:[%s1239_s0 + $0x10] sm:$0xff] }
  0x10   :  { %817 = vmatprep.subr.bf16.mxu0 %v931_v16  ;;  %v960_v48 = vld [vmem:[%s1240_s1 + $0x120] sm:$0xff]   ;;  %v962_v52 = vld [vmem:[%s1240_s1 + $0x128] sm:$0xff]   ;;  %v748_v53 = vcombine.high %v24_v51, %v24_v51  ;;  %v970_v54 = vld [vmem:[%s1239_s0 + $0x18] ss:$0 sps:$4 sm:$0xff]  }
  0x11   :  { %838 = vmatpush3.bf16.msra.mxu1 %v930_v15  ;;  %v967_v50 = vld [vmem:[%s1240_s1 + $0x180] sm:$0xff]   ;;  %v963_v55 = vld [vmem:[%s1240_s1 + $0x170] sm:$0xff]  }
  0x12   :  { %839 = vmatprep.subr.bf16.mxu1 %v933_v18  ;;  %v964_v56 = vld [vmem:[%s1240_s1 + $0x130] sm:$0xff]  }
  0x13   :  { %818 = vmatpush3.bf16.msra.mxu0 %v932_v17 }
  0x14   :  { %819 = vmatprep.subr.bf16.mxu0 %v935_v20 }
  0x15   :  { %840 = vmatpush3.bf16.msra.mxu1 %v934_v19 }
  0x16   :  { %841 = vmatprep.subr.bf16.mxu1 %v937_v22 }
  0x17   :  { %820 = vmatpush3.bf16.msra.mxu0 %v936_v21 }
  0x18   :  { %821 = vmatprep.subr.bf16.mxu0 %v939_v24 }
  0x19   :  { %842 = vmatpush3.bf16.msra.mxu1 %v938_v23 }
  0x1a   :  { %843 = vmatprep.subr.bf16.mxu1 %v941_v26 }
  0x1b   :  { %822 = vmatpush3.bf16.msra.mxu0 %v940_v25 }
  0x1c   :  { %823 = vmatprep.subr.bf16.mxu0 %v943_v28 }
  0x1d   :  { %844 = vmatpush3.bf16.msra.mxu1 %v942_v27 }
  0x1e   :  { %845 = vmatprep.subr.bf16.mxu1 %v945_v30 }
  0x1f   :  { %824 = vmatpush3.bf16.msra.mxu0 %v944_v29 }
  0x20   :  { %853 = vmatprep.subr.bf16.mxu0 %v949_v35 }
  0x21   :  { %846 = vmatpush3.bf16.msra.mxu1 %v948_v34 }
  0x22   :  { %486 = vmatmul.mubr.bf16.vlgmr.msra.gmra.mrb[0].mxu0 %v743_v32  ;;  %886 = vmatprep.subr.bf16.mxu1 %v1003_v43 }
  0x23   :  { %854 = vmatpush3.bf16.msra.mxu0 %v952_v39  ;;  %565 = vmatprep.mubr.bf16.mxu0 %v748_v53 }
  0x24   :  { %526 = vmatmul.mubr.bf16.vlgmr.msra.gmra.mrb[0].mxu1 %v745_v37  ;;  %855 = vmatprep.subr.bf16.mxu0 %v953_v40 }
  0x25   :  { %888 = vmatprep.mubr.msk.bf16.mxu1 %vm1004_vm0, %v1003_v43  ;;  %887 = vmatpush3.bf16.msra.mxu1 %v967_v50 }
  0x26   :  { %892 = vmatprep.subr.bf16.mxu1 %v1003_v43 }
  0x27   :  { %856 = vmatpush3.bf16.msra.mxu0 %v954_v41 }
  0x28   :  { %857 = vmatprep.subr.bf16.mxu0 %v955_v42 }
  0x2b   :  { %858 = vmatpush3.bf16.msra.mxu0 %v956_v44 }
  0x2c   :  { %859 = vmatprep.subr.bf16.mxu0 %v957_v45  ;;  %889 = vmatmul.mubr.msk.bf16.vlgmr.msra.gmra.mrb[4].mxu1 %vm449_vm1, %v970_v54 }
  0x2d   :  { %908 = vmatprep.mubr.msk.bf16.mxu1 %vm1004_vm0, %v1003_v43 }
  0x2f   :  { %860 = vmatpush3.bf16.msra.mxu0 %v958_v46 }
  0x30   :  { %861 = vmatprep.subr.bf16.mxu0 %v959_v47 }
  0x33   :  { %862 = vmatpush3.bf16.msra.mxu0 %v960_v48 }
  0x34   :  { %863 = vmatprep.subr.bf16.mxu0 %v961_v49 }
  0x37   :  { %864 = vmatpush3.bf16.msra.mxu0 %v962_v52 }
  0x38   :  { %10 = vsyncpa [#allocation3], 0  ;;  %865 = vmatprep.subr.bf16.mxu0 %v963_v55  ;;  %v965_v57 = vld [vmem:[%s1240_s1 + $0x178] sm:$0xff]   ;;  %v747_v59 = vcombine.low %v24_v51, %v24_v51  ;;  %v971_v60 = vld [vmem:[%s1242_s3] sm:$0xff]   ;;  %s1005_s15 = smov [#allocation2]  }
  0x39   :  { %v966_v58 = vld [vmem:[%s1240_s1 + $0x138] sm:$0xff]   ;;  %893 = vmatpush3.bf16.msra.mxu1 %v971_v60  ;;  %v972_v61 = vld [vmem:[%s1242_s3 + $0x8] sm:$0xff]   ;;  %v973_v62 = vld [vmem:[%s1242_s3 + $0x10] sm:$0xff]   ;;  %s734_s16 = sshll.u32 %s1005_s15, 4  ;;  %s735_s16 = int_to_ptr.vmem [resolvable:$true] %s734_s16 }
  0x3a   :  { %894 = vmatprep.subr.bf16.mxu1 %v1003_v43  ;;  %v974_v63 = vld [vmem:[%s1242_s3 + $0x18] sm:$0xff]   ;;  %v975_v0 = vld [vmem:[%s1242_s3 + $0x20] sm:$0xff]   ;;  %v976_v1 = vld [vmem:[%s1242_s3 + $0x28] sm:$0xff]   ;;  %s979_s17 = scalar_lea.vmem %s735_s16, 64  ;;  %p984_p1 = scmp.lt.s32.totalorder %s735_s16, %s735_s16 }
  0x3b   :  { %866 = vmatpush3.bf16.msra.mxu0 %v964_v56  ;;  %v977_v2 = vld [vmem:[%s1242_s3 + $0x30] sm:$0xff]   ;;  %v978_v3 = vld [vmem:[%s1242_s3 + $0x38] sm:$0xff]   ;;  %v742_v5 = vld [vmem:[%s1241_s2] ss:$0 sm:$0xff]  ;;  %p980_p0 = scmp.ne.s32.totalorder %s735_s16, %s979_s17  ;;  %p985_p2 = scmp.lt.s32.totalorder %s979_s17, %s979_s17 }
  0x3c   :  { %867 = vmatprep.subr.bf16.mxu0 %v965_v57  ;;  %v800_v30 = vld [vmem:[%s1243_s4] ss:$0 sm:$0xff] }
  0x3d   :  { %895 = vmatpush3.bf16.msra.mxu1 %v972_v61  ;;  %p986_p3 = por %p985_p2, %p984_p1 }
  0x3e   :  { %896 = vmatprep.subr.bf16.mxu1 %v1003_v43 }
  0x3f   :  { %868 = vmatpush3.bf16.msra.mxu0 %v966_v58  ;;  %p987_p4 = pnand %p986_p3, %p980_p0 }
  0x41   :  { %897 = vmatpush3.bf16.msra.mxu1 %v973_v62 }
  0x42   :  { %566 = vmatmul.mubr.bf16.vlgmr.msra.gmra.mrb[4].mxu0 %v747_v59  ;;  %898 = vmatprep.subr.bf16.mxu1 %v1003_v43 }
  0x45   :  { %899 = vmatpush3.bf16.msra.mxu1 %v974_v63 }
  0x46   :  { %900 = vmatprep.subr.bf16.mxu1 %v1003_v43 }
  0x49   :  { %901 = vmatpush3.bf16.msra.mxu1 %v975_v0 }
  0x4a   :  { %902 = vmatprep.subr.bf16.mxu1 %v1003_v43 }
  0x4d   :  { %903 = vmatpush3.bf16.msra.mxu1 %v976_v1 }
  0x4e   :  { %904 = vmatprep.subr.bf16.mxu1 %v1003_v43 }
  0x51   :  { %905 = vmatpush3.bf16.msra.mxu1 %v977_v2 }
  0x52   :  { %906 = vmatprep.subr.bf16.mxu1 %v1003_v43 }
  0x55   :  { %907 = vmatpush3.bf16.msra.mxu1 %v978_v3 }
  0xf5   :  { %v825_v4 = vpop.f32.mrb[0].mxu0 }
  0xf6   :  { %v826_v6 = vpop.f32.mrb[1].mxu0 }
  0xf7   :  { %v827_v7 = vadd.f32 %v826_v6, %v825_v4  ;;  %v828_v8 = vpop.f32.mrb[2].mxu0  ;;  %v847_v9 = vpop.f32.mrb[0].mxu1 }
  0xf8   :  { %v829_v10 = vpop.f32.mrb[3].mxu0  ;;  %v848_v11 = vpop.f32.mrb[1].mxu1 }
  0xf9   :  { %v488_v12 = vadd.f32 %v827_v7, %v742_v5  ;;  %v849_v13 = vadd.f32 %v848_v11, %v847_v9  ;;  %v850_v14 = vpop.f32.mrb[2].mxu1 }
  0xfa   :  { %v851_v15 = vpop.f32.mrb[3].mxu1 }
  0xfb   :  { %v528_v16 = vadd.f32 %v849_v13, %v488_v12 }
  0xff   :  { %v607_v17 = vpop.f32.mrb[4].mxu1 }
 0x100   :  { %v890_v18 = vpop.f32.mrb[5].mxu1 }
 0x101   :  { %v610_v19 = vpop.f32.mrb[6].mxu1 }
 0x102   :  { %v891_v20 = vpop.f32.mrb[7].mxu1 }
 0x115   :  { %v869_v21 = vpop.f32.mrb[4].mxu0 }
 0x116   :  { %v870_v22 = vpop.f32.mrb[5].mxu0 }
 0x117   :  { %v871_v23 = vadd.f32 %v870_v22, %v869_v21  ;;  %v872_v24 = vpop.f32.mrb[6].mxu0 }
 0x118   :  { %v873_v25 = vpop.f32.mrb[7].mxu0 }
 0x119   :  { %v568_v26 = vadd.f32 %v871_v23, %v528_v16 }
 0x11b   :  { %v608_v27 = vadd.f32 %v607_v17, %v568_v26 }
 0x11d   :  { %v613_v28 = vmax.f32 %v608_v27, 0.0 }
 0x11f   :  { %v614_v29 = vpack.c.bf16 %v613_v28, %v613_v28 }
 0x121   :  { %909 = vmatmul.mubr.bf16.vlgmr.msra.gmra.mrb[8].mxu1 %v614_v29 }
 0x1f4   :  { %v720_v31 = vpop.f32.mrb[8].mxu1 }
 0x1f5   :  { %v721_v32 = vadd.f32 %v800_v30, %v720_v31  ;;  %v910_v33 = vpop.f32.mrb[9].mxu1 }
 0x1f6   :  { %v723_v34 = vpop.f32.mrb[10].mxu1 }
 0x1f7   :  { %v726_v35 = vpack.c.bf16 %v721_v32, %v721_v32  ;;  %v911_v36 = vpop.f32.mrb[11].mxu1 }
 0x1f9   :  { %727 = vst [vmem:[#allocation2] sm:$0xf] %v726_v35 }
 0x1fa   :  { %990 = shalt.err (!%p987_p4)
}
 0x1fb   :  { %s991_s4 = scalar_lea.hbm %s1244_s5, 64 }
 0x1fc   :  { %p992_p5 = scmp.ne.s32.totalorder %s1244_s5, %s991_s4  ;;  %p995_p6 = scmp.lt.u32.totalorder %s991_s4, %s1244_s5 }
 0x1fe   :  { %p997_p7 = pnand %p995_p6, %p992_p5 }
 0x200   :  { %1000 = shalt.err (!%p997_p7)
}
 0x201   :  { %737 = dma.vmem_to_hbm [thread:$0]  %s735_s16, 64, %s1244_s5, [#allocation3]  }
 0x202   :  { %1001 = dma.done.wait [#allocation3], 64  }
 0x203   :  { %1002 = vsyncadd [#allocation3], 4294967232 }
 0x204   :  { %741 = vsyncpa [#allocation3], 1 }

</bundles_post_ra>
